<compile_context>
chip_gen: v5e
topology: v5e:2x2
jax: 0.10.0
libtpu: 0.0.40
codegen_flags: <defaults>
</compile_context>

<pallas_src>
import jax
import jax.numpy as jnp
from jax.experimental import pallas as pl
from jax.experimental.pallas import tpu as pltpu


def _dueling_kernel(x_ref, w1_ref, b1_ref, ws1_ref, bs1_ref, wh_ref, bh_ref,
                    q_ref):
    # Cast activations to bf16 immediately before each MXU op; accumulate in
    # f32; do bias + ReLU in f32.
    x = x_ref[...].astype(jnp.bfloat16)

    # fc1 + ReLU:                      (bb, S) @ (S, F1) -> (bb, F1)
    h = jnp.dot(x, w1_ref[...], preferred_element_type=jnp.float32) + b1_ref[...]
    h = jnp.maximum(h, 0.0).astype(jnp.bfloat16)

    # fused stream 1 [fc_value1 | fc_adv1] + ReLU:
    #                                  (bb, F1) @ (F1, 2*F2) -> (bb, 2*F2)
    s1 = jnp.dot(h, ws1_ref[...], preferred_element_type=jnp.float32) + bs1_ref[...]
    # ReLU in f32, then keep the dominant (bb, 2*F2) temp in bf16 (halves the
    # vector-store/load bytes between the two MXU stages).
    s1 = jnp.maximum(s1, 0.0).astype(jnp.bfloat16)

    # fused head, block-diagonal [fc_value2 ; fc_adv2] + ReLU:
    #                                  (bb, 2*F2) @ (2*F2, 1+A) -> (bb, 1+A)
    # TODO(synk): if bundle counting shows the MXU (vex) slot saturating, move
    # these 1+A columns off the MXU (VPU broadcast-mul + XLU lane-sum).
    head = jnp.dot(s1, wh_ref[...], preferred_element_type=jnp.float32) + bh_ref[...]
    head = jnp.maximum(head, 0.0)

    v = head[:, 0:1]   # state value       (bb, 1)
    a = head[:, 1:]    # action advantages (bb, A)

    # dueling aggregation: Q = V + A - mean(A, axis=1, keepdims=True)
    avg = jnp.mean(a, axis=1, keepdims=True)
    q_ref[...] = (v + a - avg).astype(q_ref.dtype)


def fuse_params(params):
    """Build the 3-matmul fused parameter set (done once, outside the kernel).

    Weights (MXU operands) are stored as bf16; biases stay f32 because they are
    added to the f32 accumulator.
    """
    (w1, b1, wv1, bv1, wv2, bv2, wa1, ba1, wa2, ba2) = params
    fc2 = wv1.shape[1]
    a_sz = wa2.shape[1]

    # stream 1: [fc_value1 | fc_adv1]
    ws1 = jnp.concatenate([wv1, wa1], axis=1)           # (F1, 2*F2)
    bs1 = jnp.concatenate([bv1, ba1], axis=1)           # (1, 2*F2)

    # head: block-diagonal so the value half only feeds column 0 (fc_value2)
    # and the advantage half only feeds columns 1: (fc_adv2).
    wh = jnp.zeros((2 * fc2, 1 + a_sz), jnp.float32)
    wh = wh.at[:fc2, 0:1].set(wv2)
    wh = wh.at[fc2:, 1:].set(wa2)
    bh = jnp.concatenate([bv2, ba2], axis=1)            # (1, 1+A)

    return (w1.astype(jnp.bfloat16), b1,
            ws1.astype(jnp.bfloat16), bs1,
            wh.astype(jnp.bfloat16), bh)


def _pick_batch_tile(batch, block_b):
    """Batch-tile size.

    Whole batch when small (single grid step).  Once the batch is big enough to
    split (> 256 rows), pick a multiple-of-8 tile that yields at least 2 grid
    steps (so 'parallel' shards across both TensorCores on v7x), capped at
    block_b to amortize per-step overhead without over-growing VMEM temps.
    """
    if batch <= 256:
        return batch
    half = -(-batch // 2)              # cdiv(batch, 2)
    half = ((half + 7) // 8) * 8       # align to sublane multiple
    return min(block_b, half)


def q_dueling_forward(state, fused_params, *, block_b=2048):
    """state: (B, state_size) float32. Returns Q-values (B, action_size) f32."""
    (w1, b1, ws1, bs1, wh, bh) = fused_params
    B, S = state.shape
    F1 = w1.shape[1]
    F2x2 = ws1.shape[1]
    Ap1 = wh.shape[1]
    A = Ap1 - 1

    bb = _pick_batch_tile(B, block_b)
    grid = (pl.cdiv(B, bb),)

    const = lambda i: (0, 0)  # weights/biases: same block every step

    flops = 2 * B * (S * F1 + F1 * F2x2 + F2x2 * Ap1)
    bytes_accessed = (
        B * S * 4 + B * A * 4                          # state in, Q out (f32)
        + S * F1 * 2 + F1 * 4                          # w1 (bf16), b1 (f32)
        + F1 * F2x2 * 2 + F2x2 * 4                     # ws1, bs1
        + F2x2 * Ap1 * 2 + Ap1 * 4)                    # wh, bh

    return pl.pallas_call(
        _dueling_kernel,
        out_shape=jax.ShapeDtypeStruct((B, A), jnp.float32),
        grid=grid,
        in_specs=[
            pl.BlockSpec((bb, S), lambda i: (i, 0)),     # state, tiled over batch
            pl.BlockSpec((S, F1), const),                # w1 (bf16)
            pl.BlockSpec((1, F1), const),                # b1
            pl.BlockSpec((F1, F2x2), const),             # fused stream-1 weight
            pl.BlockSpec((1, F2x2), const),              # fused stream-1 bias
            pl.BlockSpec((F2x2, Ap1), const),            # fused head weight
            pl.BlockSpec((1, Ap1), const),               # fused head bias
        ],
        out_specs=pl.BlockSpec((bb, A), lambda i: (i, 0)),
        compiler_params=pltpu.CompilerParams(
            dimension_semantics=("parallel",),
            vmem_limit_bytes=64 * 1024 * 1024),
        cost_estimate=pl.CostEstimate(
            flops=flops, transcendentals=0, bytes_accessed=bytes_accessed),
    )(state, w1, b1, ws1, bs1, wh, bh)


def init_params(key, state_size, action_size, fc1_units=64, fc2_units=256):
    """nn.Linear-style init: U(-1/sqrt(in), 1/sqrt(in)).

    Weights are stored as (in, out) = W^T relative to PyTorch, biases as
    (1, out) so they are 2-D VMEM-friendly blocks.  Kept in f32 here; the
    fused/bf16 conversion happens in fuse_params.
    """
    def linear(k, fan_in, fan_out):
        kw, kb = jax.random.split(k)
        bound = 1.0 / jnp.sqrt(jnp.float32(fan_in))
        w = jax.random.uniform(kw, (fan_in, fan_out), jnp.float32, -bound, bound)
        b = jax.random.uniform(kb, (1, fan_out), jnp.float32, -bound, bound)
        return w, b

    k1, k2, k3, k4, k5 = jax.random.split(key, 5)
    w1, b1 = linear(k1, state_size, fc1_units)
    wv1, bv1 = linear(k2, fc1_units, fc2_units)
    wv2, bv2 = linear(k3, fc2_units, 1)
    wa1, ba1 = linear(k4, fc1_units, fc2_units)
    wa2, ba2 = linear(k5, fc2_units, action_size)
    return (w1, b1, wv1, bv1, wv2, bv2, wa1, ba1, wa2, ba2)


def reference_forward(state, params):
    """Pure-JAX f32 reference mirroring the PyTorch forward exactly (unfused)."""
    (w1, b1, wv1, bv1, wv2, bv2, wa1, ba1, wa2, ba2) = params
    relu = lambda t: jnp.maximum(t, 0.0)
    dot = lambda a, b: jnp.dot(a, b, preferred_element_type=jnp.float32)
    x = relu(dot(state, w1) + b1)
    v = relu(dot(x, wv1) + bv1)
    a = relu(dot(x, wa1) + ba1)
    v = relu(dot(v, wv2) + bv2)
    a = relu(dot(a, wa2) + ba2)
    avg = jnp.mean(a, axis=1, keepdims=True)
    return v + a - avg


if __name__ == "__main__":
    # Shapes consistent with the module: state_size=16, action_size=4,
    # fc1_units=64, fc2_units=256, batch=8.
    state_size, action_size = 16, 4
    batch = 8

    key = jax.random.PRNGKey(0)
    pkey, skey = jax.random.split(key)
    params = init_params(pkey, state_size, action_size)
    state = jax.random.normal(skey, (batch, state_size), jnp.float32)

    fused = fuse_params(params)
    q = q_dueling_forward(state, fused)
    q = jax.block_until_ready(q)

    # Reference stays f32; tolerance relaxed for the bf16 MXU operands.
    q_ref = reference_forward(state, params)
    assert q.shape == (batch, action_size)
    assert jnp.allclose(q, q_ref, atol=3e-2, rtol=3e-2), "mismatch vs reference"

    print("KERNEL_OK")
</pallas_src>

<mosaic_0001>
module attributes {stable_mosaic.version = 11 : i64} {
  func.func @_dueling_kernel(%arg0: i32, %arg1: memref<8x16xf32, #tpu.memory_space<vmem>>, %arg2: memref<16x64xbf16, #tpu.memory_space<vmem>>, %arg3: memref<1x64xf32, #tpu.memory_space<vmem>>, %arg4: memref<64x512xbf16, #tpu.memory_space<vmem>>, %arg5: memref<1x512xf32, #tpu.memory_space<vmem>>, %arg6: memref<512x5xbf16, #tpu.memory_space<vmem>>, %arg7: memref<1x5xf32, #tpu.memory_space<vmem>>, %arg8: memref<8x4xf32, #tpu.memory_space<vmem>>) attributes {dimension_semantics = [#tpu.dimension_semantics<parallel>], iteration_bounds = array<i64: 1>, scalar_prefetch = 0 : i64, scratch_operands = 0 : i64, tpu.core_type = #tpu.core_type<tc>, window_params = [{transform_indices = @transform_0, window_bounds = array<i64: 8, 16>}, {pipeline_mode = #tpu.pipeline_mode<synchronous>, transform_indices = @transform_1, window_bounds = array<i64: 16, 64>}, {pipeline_mode = #tpu.pipeline_mode<synchronous>, transform_indices = @transform_2, window_bounds = array<i64: 1, 64>}, {pipeline_mode = #tpu.pipeline_mode<synchronous>, transform_indices = @transform_3, window_bounds = array<i64: 64, 512>}, {pipeline_mode = #tpu.pipeline_mode<synchronous>, transform_indices = @transform_4, window_bounds = array<i64: 1, 512>}, {pipeline_mode = #tpu.pipeline_mode<synchronous>, transform_indices = @transform_5, window_bounds = array<i64: 512, 5>}, {pipeline_mode = #tpu.pipeline_mode<synchronous>, transform_indices = @transform_6, window_bounds = array<i64: 1, 5>}, {transform_indices = @transform_7, window_bounds = array<i64: 8, 4>}]} {
    %c0 = arith.constant 0 : index
    %c0_0 = arith.constant 0 : index
    %0 = vector.load %arg1[%c0, %c0_0] : memref<8x16xf32, #tpu.memory_space<vmem>>, vector<8x16xf32>
    %1 = arith.truncf %0 : vector<8x16xf32> to vector<8x16xbf16>
    %c0_1 = arith.constant 0 : index
    %c0_2 = arith.constant 0 : index
    %2 = vector.load %arg2[%c0_1, %c0_2] : memref<16x64xbf16, #tpu.memory_space<vmem>>, vector<16x64xbf16>
    %cst = arith.constant dense<0.000000e+00> : vector<8x64xf32>
    %3 = tpu.matmul %1, %2, %cst {dimension_numbers = #tpu.dot_dimension_numbers<[1], [0], [0], [1], [0, 0, 1, 1], [], []>} : vector<8x16xbf16>, vector<16x64xbf16>, vector<8x64xf32> -> vector<8x64xf32>
    %c0_3 = arith.constant 0 : index
    %c0_4 = arith.constant 0 : index
    %4 = vector.load %arg3[%c0_3, %c0_4] : memref<1x64xf32, #tpu.memory_space<vmem>>, vector<1x64xf32>
    %5 = vector.broadcast %4 : vector<1x64xf32> to vector<8x64xf32>
    %6 = arith.addf %3, %5 : vector<8x64xf32>
    %cst_5 = arith.constant 0.000000e+00 : f32
    %7 = vector.broadcast %cst_5 : f32 to vector<8x64xf32>
    %8 = arith.maximumf %6, %7 : vector<8x64xf32>
    %9 = arith.truncf %8 : vector<8x64xf32> to vector<8x64xbf16>
    %c0_6 = arith.constant 0 : index
    %c0_7 = arith.constant 0 : index
    %10 = vector.load %arg4[%c0_6, %c0_7] : memref<64x512xbf16, #tpu.memory_space<vmem>>, vector<64x512xbf16>
    %cst_8 = arith.constant dense<0.000000e+00> : vector<8x512xf32>
    %11 = tpu.matmul %9, %10, %cst_8 {dimension_numbers = #tpu.dot_dimension_numbers<[1], [0], [0], [1], [0, 0, 1, 1], [], []>} : vector<8x64xbf16>, vector<64x512xbf16>, vector<8x512xf32> -> vector<8x512xf32>
    %c0_9 = arith.constant 0 : index
    %c0_10 = arith.constant 0 : index
    %12 = vector.load %arg5[%c0_9, %c0_10] : memref<1x512xf32, #tpu.memory_space<vmem>>, vector<1x512xf32>
    %13 = vector.broadcast %12 : vector<1x512xf32> to vector<8x512xf32>
    %14 = arith.addf %11, %13 : vector<8x512xf32>
    %cst_11 = arith.constant 0.000000e+00 : f32
    %15 = vector.broadcast %cst_11 : f32 to vector<8x512xf32>
    %16 = arith.maximumf %14, %15 : vector<8x512xf32>
    %17 = arith.truncf %16 : vector<8x512xf32> to vector<8x512xbf16>
    %c0_12 = arith.constant 0 : index
    %c0_13 = arith.constant 0 : index
    %18 = vector.load %arg6[%c0_12, %c0_13] : memref<512x5xbf16, #tpu.memory_space<vmem>>, vector<512x5xbf16>
    %cst_14 = arith.constant dense<0.000000e+00> : vector<8x5xf32>
    %19 = tpu.matmul %17, %18, %cst_14 {dimension_numbers = #tpu.dot_dimension_numbers<[1], [0], [0], [1], [0, 0, 1, 1], [], []>} : vector<8x512xbf16>, vector<512x5xbf16>, vector<8x5xf32> -> vector<8x5xf32>
    %c0_15 = arith.constant 0 : index
    %c0_16 = arith.constant 0 : index
    %20 = vector.load %arg7[%c0_15, %c0_16] : memref<1x5xf32, #tpu.memory_space<vmem>>, vector<1x5xf32>
    %21 = vector.broadcast %20 : vector<1x5xf32> to vector<8x5xf32>
    %22 = arith.addf %19, %21 : vector<8x5xf32>
    %cst_17 = arith.constant 0.000000e+00 : f32
    %23 = vector.broadcast %cst_17 : f32 to vector<8x5xf32>
    %24 = arith.maximumf %22, %23 : vector<8x5xf32>
    %25 = vector.extract_strided_slice %24 {offsets = [0, 0], sizes = [8, 1], strides = [1, 1]} : vector<8x5xf32> to vector<8x1xf32>
    %26 = vector.extract_strided_slice %24 {offsets = [0, 1], sizes = [8, 4], strides = [1, 1]} : vector<8x5xf32> to vector<8x4xf32>
    %cst_18 = arith.constant dense<0.000000e+00> : vector<8xf32>
    %27 = vector.multi_reduction <add>, %26, %cst_18 [1] : vector<8x4xf32> to vector<8xf32>
    %28 = vector.shape_cast %27 : vector<8xf32> to vector<8x1xf32>
    %cst_19 = arith.constant 4.000000e+00 : f32
    %29 = vector.broadcast %cst_19 : f32 to vector<8x1xf32>
    %30 = arith.divf %28, %29 : vector<8x1xf32>
    %31 = vector.broadcast %25 : vector<8x1xf32> to vector<8x4xf32>
    %32 = arith.addf %31, %26 : vector<8x4xf32>
    %33 = vector.broadcast %30 : vector<8x1xf32> to vector<8x4xf32>
    %34 = arith.subf %32, %33 : vector<8x4xf32>
    %c0_20 = arith.constant 0 : index
    %c0_21 = arith.constant 0 : index
    %35 = vector.load %arg8[%c0_20, %c0_21] : memref<8x4xf32, #tpu.memory_space<vmem>>, vector<8x4xf32>
    tpu.vector_store %arg8[%c0_20, %c0_21], %34 {strides = array<i32>} : memref<8x4xf32, #tpu.memory_space<vmem>>, vector<8x4xf32>,
    return
  }
  func.func @transform_0(%arg0: i32) -> (i32, i32) {
    %c0_i32 = arith.constant 0 : i32
    %c0_i32_0 = arith.constant 0 : i32
    return %arg0, %c0_i32 : i32, i32
  }
  func.func @transform_1(%arg0: i32) -> (i32, i32) {
    %c0_i32 = arith.constant 0 : i32
    %c0_i32_0 = arith.constant 0 : i32
    %c0_i32_1 = arith.constant 0 : i32
    return %c0_i32, %c0_i32_0 : i32, i32
  }
  func.func @transform_2(%arg0: i32) -> (i32, i32) {
    %c0_i32 = arith.constant 0 : i32
    %c0_i32_0 = arith.constant 0 : i32
    %c0_i32_1 = arith.constant 0 : i32
    return %c0_i32, %c0_i32_0 : i32, i32
  }
  func.func @transform_3(%arg0: i32) -> (i32, i32) {
    %c0_i32 = arith.constant 0 : i32
    %c0_i32_0 = arith.constant 0 : i32
    %c0_i32_1 = arith.constant 0 : i32
    return %c0_i32, %c0_i32_0 : i32, i32
  }
  func.func @transform_4(%arg0: i32) -> (i32, i32) {
    %c0_i32 = arith.constant 0 : i32
    %c0_i32_0 = arith.constant 0 : i32
    %c0_i32_1 = arith.constant 0 : i32
    return %c0_i32, %c0_i32_0 : i32, i32
  }
  func.func @transform_5(%arg0: i32) -> (i32, i32) {
    %c0_i32 = arith.constant 0 : i32
    %c0_i32_0 = arith.constant 0 : i32
    %c0_i32_1 = arith.constant 0 : i32
    return %c0_i32, %c0_i32_0 : i32, i32
  }
  func.func @transform_6(%arg0: i32) -> (i32, i32) {
    %c0_i32 = arith.constant 0 : i32
    %c0_i32_0 = arith.constant 0 : i32
    %c0_i32_1 = arith.constant 0 : i32
    return %c0_i32, %c0_i32_0 : i32, i32
  }
  func.func @transform_7(%arg0: i32) -> (i32, i32) {
    %c0_i32 = arith.constant 0 : i32
    %c0_i32_0 = arith.constant 0 : i32
    return %arg0, %c0_i32 : i32, i32
  }
}

</mosaic_0001>

<bundles_post_ra>
// kernel: tpu_custom_call.1
= control target key start
LH: loop header
LB: loop body
LE: loop exit
PB: predicated region body
PF: predicated region fallthrough
CT: control target
= control target key end

     0   :  { %vm41_vm0 = vcmask 130048   ;;  %vm166_vm1 = vcmask 523264   ;;  %s834_s8 = smov 127   ;;  %vm547_vm2 = vcmask 31744   ;;  %s1089_s1 = inlined_call_operand.vmem [shape: bf16[16,64], index: 1, kind: input, shape index: {}]   ;;  %s1090_s0 = inlined_call_operand.vmem [shape: f32[8,16], index: 0, kind: input, shape index: {}]   ;;  %s1091_s3 = inlined_call_operand.vmem [shape: bf16[64,512], index: 3, kind: input, shape index: {}]   ;;  %s1092_s2 = inlined_call_operand.vmem [shape: f32[1,64], index: 2, kind: input, shape index: {}]   ;;  %s1093_s5 = inlined_call_operand.vmem [shape: bf16[512,5], index: 5, kind: input, shape index: {}]   ;;  %s1094_s6 = inlined_call_operand.vmem [shape: f32[1,5], index: 6, kind: input, shape index: {}]   ;;  %s1095_s4 = inlined_call_operand.vmem [shape: f32[1,512], index: 4, kind: input, shape index: {}]   ;;  %s1096_s7 = inlined_call_operand.vmem [shape: f32[8,4], index: 7, kind: output, shape index: {}]  }
   0x1   :  { %v775_v0 = vld [vmem:[%s1089_s1] sm:$0xff]  ;;  %v790_v4 = vld [vmem:[%s1091_s3 + $0x6c] sm:$0xf0]  ;;  %v631_v6 = vld [vmem:[%s1091_s3 + $0x70] sm:$0xf0] }
   0x2   :  { %v27_v1 = vld [vmem:[%s1090_s0] sm:$0xff]  ;;  %52 = vmatpush.bf16.msra.mxu0 %v775_v0  ;;  %v637_v9 = vld [vmem:[%s1091_s3 + $0x68] sm:$0xf]  ;;  %v791_v10 = vld [vmem:[%s1091_s3 + $0x74] sm:$0xf0] }
   0x3   :  { %v629_v2 = vld [vmem:[%s1091_s3 + $0x60] sm:$0xf]  ;;  %v28_v3 = vpack.c.bf16 %v27_v1, %v27_v1  ;;  %v788_v5 = vld [vmem:[%s1091_s3 + $0x64] sm:$0xf]  ;;  %v789_v11 = vld [vmem:[%s1091_s3 + $0x6c] sm:$0xf]  ;;  %v638_v12 = vor.u32 %v791_v10, %v637_v9 }
   0x4   :  { %v630_v7 = vor.u32 %v790_v4, %v629_v2  ;;  %v634_v8 = vor.u32 %v788_v5, %v631_v6  ;;  %v639_v13 = vld [vmem:[%s1091_s3 + $0x78] sm:$0xf0]  ;;  %v613_v14 = vld [vmem:[%s1091_s3 + $0x40] sm:$0xf]  ;;  %v786_v15 = vld [vmem:[%s1091_s3 + $0x4c] sm:$0xf0] }
   0x5   :  { %v642_v16 = vor.u32 %v789_v11, %v639_v13  ;;  %v614_v17 = vor.u32 %v786_v15, %v613_v14  ;;  %v784_v18 = vld [vmem:[%s1091_s3 + $0x44] sm:$0xf]  ;;  %v615_v19 = vld [vmem:[%s1091_s3 + $0x50] sm:$0xf0]  ;;  %v621_v20 = vld [vmem:[%s1091_s3 + $0x48] sm:$0xf]  ;;  %578 = vmatmul.msk.bf16.vlgmr.msra.gmra.mxu0 %vm41_vm0, %v28_v3  ;;  %200 = vmatpush.bf16.msra.mxu3 %v638_v12 }
   0x6   :  { %174 = vmatpush.bf16.msra.mxu1 %v630_v7  ;;  %187 = vmatpush.bf16.msra.mxu2 %v634_v8  ;;  %v618_v21 = vor.u32 %v784_v18, %v615_v19  ;;  %v787_v22 = vld [vmem:[%s1091_s3 + $0x54] sm:$0xf0]  ;;  %v785_v23 = vld [vmem:[%s1091_s3 + $0x4c] sm:$0xf]  ;;  %v623_v24 = vld [vmem:[%s1091_s3 + $0x58] sm:$0xf0] }
   0x7   :  { %213 = vmatpush.bf16.msrb.mxu0 %v642_v16  ;;  %v622_v25 = vor.u32 %v787_v22, %v621_v20  ;;  %v626_v26 = vor.u32 %v785_v23, %v623_v24  ;;  %v597_v27 = vld [vmem:[%s1091_s3 + $0x20] sm:$0xf]  ;;  %v782_v28 = vld [vmem:[%s1091_s3 + $0x2c] sm:$0xf0]  ;;  %v780_v29 = vld [vmem:[%s1091_s3 + $0x24] sm:$0xf] }
   0x8   :  { %v598_v30 = vor.u32 %v782_v28, %v597_v27  ;;  %v599_v31 = vld [vmem:[%s1091_s3 + $0x30] sm:$0xf0]  ;;  %v605_v32 = vld [vmem:[%s1091_s3 + $0x28] sm:$0xf]  ;;  %v783_v33 = vld [vmem:[%s1091_s3 + $0x34] sm:$0xf0] }
   0x9   :  { %201 = vmatpush.bf16.msra.mxu3 %v622_v25  ;;  %v602_v34 = vor.u32 %v780_v29, %v599_v31  ;;  %v606_v35 = vor.u32 %v783_v33, %v605_v32  ;;  %v781_v36 = vld [vmem:[%s1091_s3 + $0x2c] sm:$0xf]  ;;  %v607_v37 = vld [vmem:[%s1091_s3 + $0x38] sm:$0xf0]  ;;  %v581_v39 = vld [vmem:[%s1091_s3] sm:$0xf] }
   0xa   :  { %175 = vmatpush.bf16.msra.mxu1 %v614_v17  ;;  %188 = vmatpush.bf16.msra.mxu2 %v618_v21  ;;  %v610_v38 = vor.u32 %v781_v36, %v607_v37  ;;  %v778_v40 = vld [vmem:[%s1091_s3 + $0xc] sm:$0xf0]  ;;  %v776_v41 = vld [vmem:[%s1091_s3 + $0x4] sm:$0xf]  ;;  %v583_v43 = vld [vmem:[%s1091_s3 + $0x10] sm:$0xf0] }
   0xb   :  { %214 = vmatpush.bf16.msrb.mxu0 %v626_v26  ;;  %v582_v42 = vor.u32 %v778_v40, %v581_v39  ;;  %v589_v44 = vld [vmem:[%s1091_s3 + $0x8] sm:$0xf]  ;;  %v779_v45 = vld [vmem:[%s1091_s3 + $0x14] sm:$0xf0]  ;;  %v586_v46 = vor.u32 %v776_v41, %v583_v43  ;;  %v777_v48 = vld [vmem:[%s1091_s3 + $0xc] sm:$0xf] }
   0xc   :  { %v590_v47 = vor.u32 %v779_v45, %v589_v44  ;;  %v591_v49 = vld [vmem:[%s1091_s3 + $0x18] sm:$0xf0]  ;;  %v798_v55 = vld [vmem:[%s1093_s5 + $0x30] sm:$0xff]  ;;  %v797_v59 = vld [vmem:[%s1093_s5 + $0x28] sm:$0xff] }
   0xd   :  { %202 = vmatpush.bf16.msra.mxu3 %v606_v35  ;;  %v594_v50 = vor.u32 %v777_v48, %v591_v49  ;;  %v799_v51 = vld [vmem:[%s1093_s5 + $0x38] sm:$0xff]  ;;  %v822_v56 = vld [vmem:[%s1093_s5 + $0xf0] sm:$0xff]  ;;  %v821_v60 = vld [vmem:[%s1093_s5 + $0xe8] sm:$0xff] }
   0xe   :  { %176 = vmatpush.bf16.msra.mxu1 %v598_v30  ;;  %189 = vmatpush.bf16.msra.mxu2 %v602_v34  ;;  %v823_v52 = vld [vmem:[%s1093_s5 + $0xf8] sm:$0xff]  ;;  %v806_v57 = vld [vmem:[%s1093_s5 + $0x70] sm:$0xff]  ;;  %v805_v61 = vld [vmem:[%s1093_s5 + $0x68] sm:$0xff] }
   0xf   :  { %215 = vmatpush.bf16.msrb.mxu0 %v610_v38  ;;  %v807_v53 = vld [vmem:[%s1093_s5 + $0x78] sm:$0xff]  ;;  %v814_v58 = vld [vmem:[%s1093_s5 + $0xb0] sm:$0xff]  ;;  %v813_v62 = vld [vmem:[%s1093_s5 + $0xa8] sm:$0xff] }
  0x10   :  { %v815_v54 = vld [vmem:[%s1093_s5 + $0xb8] sm:$0xff]  ;;  %v796_v63 = vld [vmem:[%s1093_s5 + $0x20] sm:$0xff]  ;;  %v794_v7 = vld [vmem:[%s1093_s5 + $0x10] sm:$0xff] }
  0x11   :  { %203 = vmatpush.bf16.msra.mxu3 %v590_v47  ;;  %v820_v0 = vld [vmem:[%s1093_s5 + $0xe0] sm:$0xff]  ;;  %v795_v3 = vld [vmem:[%s1093_s5 + $0x18] sm:$0xff]  ;;  %v818_v8 = vld [vmem:[%s1093_s5 + $0xd0] sm:$0xff] }
  0x12   :  { %177 = vmatpush.bf16.msra.mxu1 %v582_v42  ;;  %190 = vmatpush.bf16.msra.mxu2 %v586_v46  ;;  %v804_v1 = vld [vmem:[%s1093_s5 + $0x60] sm:$0xff]  ;;  %v819_v4 = vld [vmem:[%s1093_s5 + $0xd8] sm:$0xff]  ;;  %v793_v15 = vld [vmem:[%s1093_s5 + $0x8] sm:$0xff] }
  0x13   :  { %216 = vmatpush.bf16.msrb.mxu0 %v594_v50  ;;  %v812_v2 = vld [vmem:[%s1093_s5 + $0xa0] sm:$0xff]  ;;  %v803_v5 = vld [vmem:[%s1093_s5 + $0x58] sm:$0xff]  ;;  %v817_v16 = vld [vmem:[%s1093_s5 + $0xc8] sm:$0xff]  ;;  %v833_v50 = vmov 0  }
  0x14   :  { %v811_v6 = vld [vmem:[%s1093_s5 + $0x98] sm:$0xff]  ;;  %v829_v9 = vld [vmem:[%s1092_s2] ss:$0 sm:$0xff]  ;;  %v802_v17 = vld [vmem:[%s1093_s5 + $0x50] sm:$0xff]  ;;  %827 = vset.pattern.permute.xlu1 %v833_v50  ;;  %828 = vset.pattern.permute.xlu0 %v833_v50 }
  0x15   :  { %516 = vmatpush.bf16.msrb.mxu3 %v815_v54  ;;  %v810_v18 = vld [vmem:[%s1093_s5 + $0x90] sm:$0xff]  ;;  %v792_v19 = vld [vmem:[%s1093_s5] sm:$0xff]  ;;  %v801_v21 = vld [vmem:[%s1093_s5 + $0x48] sm:$0xff] }
  0x16   :  { %490 = vmatpush.bf16.msrb.mxu1 %v799_v51  ;;  %503 = vmatpush.bf16.msrb.mxu2 %v807_v53  ;;  %v816_v20 = vld [vmem:[%s1093_s5 + $0xc0] sm:$0xff]  ;;  %v809_v22 = vld [vmem:[%s1093_s5 + $0x88] sm:$0xff] }
  0x17   :  { %529 = vmatpush.bf16.msra.mxu0 %v823_v52  ;;  %v800_v23 = vld [vmem:[%s1093_s5 + $0x40] sm:$0xff] }
  0x18   :  { %v808_v24 = vld [vmem:[%s1093_s5 + $0x80] sm:$0xff] }
  0x19   :  { %517 = vmatpush.bf16.msrb.mxu3 %v814_v58  ;;  %v76_v25 = vld [vmem:[%s1095_s4] sm:$0xf] }
  0x1a   :  { %491 = vmatpush.bf16.msrb.mxu1 %v798_v55  ;;  %504 = vmatpush.bf16.msrb.mxu2 %v806_v57  ;;  %v78_v26 = vperm.slane %v76_v25, 0  ;;  %v81_v27 = vperm.slane %v76_v25, 3  ;;  %v79_v33 = vperm.slane %v76_v25, 1  ;;  %v80_v35 = vperm.slane %v76_v25, 2  ;;  %v830_v53 = vld [vmem:[%s1094_s6] ss:$0 sm:$0xff] }
  0x1b   :  { %530 = vmatpush.bf16.msra.mxu0 %v822_v56 }
  0x1d   :  { %518 = vmatpush.bf16.msrb.mxu3 %v813_v62 }
  0x1e   :  { %492 = vmatpush.bf16.msrb.mxu1 %v797_v59  ;;  %505 = vmatpush.bf16.msrb.mxu2 %v805_v61 }
  0x1f   :  { %531 = vmatpush.bf16.msra.mxu0 %v821_v60 }
  0x21   :  { %519 = vmatpush.bf16.msrb.mxu3 %v812_v2 }
  0x22   :  { %493 = vmatpush.bf16.msrb.mxu1 %v796_v63  ;;  %506 = vmatpush.bf16.msrb.mxu2 %v804_v1 }
  0x23   :  { %532 = vmatpush.bf16.msra.mxu0 %v820_v0 }
  0x25   :  { %520 = vmatpush.bf16.msrb.mxu3 %v811_v6 }
  0x26   :  { %494 = vmatpush.bf16.msrb.mxu1 %v795_v3  ;;  %507 = vmatpush.bf16.msrb.mxu2 %v803_v5  ;;  %v835_v3 = vmov 4.0  }
  0x27   :  { %533 = vmatpush.bf16.msra.mxu0 %v819_v4  ;;  %831 = vrcp.f32 %v835_v3 }
  0x29   :  { %521 = vmatpush.bf16.msrb.mxu3 %v810_v18 }
  0x2a   :  { %495 = vmatpush.bf16.msrb.mxu1 %v794_v7  ;;  %508 = vmatpush.bf16.msrb.mxu2 %v802_v17 }
  0x2b   :  { %534 = vmatpush.bf16.msra.mxu0 %v818_v8 }
  0x2d   :  { %522 = vmatpush.bf16.msrb.mxu3 %v809_v22  ;;  %v832_v4 = vpop.eup %831 }
  0x2e   :  { %496 = vmatpush.bf16.msrb.mxu1 %v793_v15  ;;  %509 = vmatpush.bf16.msrb.mxu2 %v801_v21  ;;  %v552_v5 = vmul.f32 4.0, %v832_v4  ;;  %vm556_vm3 = vweird.f32 %v832_v4 }
  0x2f   :  { %535 = vmatpush.bf16.msra.mxu0 %v817_v16 }
  0x30   :  { %v553_v6 = vsub.f32 1.0, %v552_v5 }
  0x31   :  { %523 = vmatpush.bf16.msrb.mxu3 %v808_v24 }
  0x32   :  { %497 = vmatpush.bf16.msrb.mxu1 %v792_v19  ;;  %510 = vmatpush.bf16.msrb.mxu2 %v800_v23  ;;  %v554_v7 = vmul.f32 %v832_v4, %v553_v6 }
  0x33   :  { %536 = vmatpush.bf16.msra.mxu0 %v816_v20 }
  0x34   :  { %v555_v8 = vadd.f32 %v832_v4, %v554_v7 }
  0x82   :  { %v54_v10 = vpop.f32.mrf.mxu0 }
  0x83   :  { %v55_v11 = vadd.f32 %v829_v9, %v54_v10  ;;  %v557_v10 = vsel %vm556_vm3, %v832_v4, %v555_v8 }
  0x85   :  { %v58_v12 = vmax.f32 %v55_v11, 0.0 }
  0x87   :  { %v59_v13 = vpack.c.bf16 %v58_v12, %v58_v12 }
  0x89   :  { %643 = vmatmul.msk.bf16.vlgmr.msra.gmra.mxu1 %vm166_vm1, %v59_v13  ;;  %644 = vmatmul.msk.bf16.vlgmr.msra.gmra.mxu2 %vm166_vm1, %v59_v13 }
  0x8a   :  { %645 = vmatmul.msk.bf16.vlgmr.msra.gmra.mxu3 %vm166_vm1, %v59_v13  ;;  %646 = vmatmul.msk.bf16.vlgmr.msrb.gmra.mxu0 %vm166_vm1, %v59_v13  ;;  %v56_v14 = vpop.f32.mrf.mxu0 }
 0x106   :  { %v179_v28 = vpop.f32.mrf.mxu1 }
 0x107   :  { %v180_v29 = vadd.f32 %v179_v28, %v78_v26  ;;  %v218_v30 = vpop.f32.mrf.mxu0 }
 0x108   :  { %v219_v31 = vadd.f32 %v218_v30, %v81_v27 }
 0x109   :  { %v222_v32 = vmax.f32 %v180_v29, 0.0 }
 0x10a   :  { %v225_v34 = vmax.f32 %v219_v31, 0.0 }
 0x10b   :  { %v226_v36 = vpack.c.bf16 %v222_v32, %v222_v32 }
 0x10c   :  { %v229_v37 = vpack.c.bf16 %v225_v34, %v225_v34  ;;  %v192_v38 = vpop.f32.mrf.mxu2 }
 0x10d   :  { %v193_v39 = vadd.f32 %v192_v38, %v79_v33  ;;  %v205_v40 = vpop.f32.mrf.mxu3  ;;  %498 = vmatmul.bf16.vlgmr.msrb.gmra.mxu1 %v226_v36 }
 0x10e   :  { %v206_v41 = vadd.f32 %v205_v40, %v80_v35  ;;  %537 = vmatmul.bf16.vlgmr.msra.gmra.mxu0 %v229_v37  ;;  %v181_v42 = vpop.f32.mrf.mxu1 }
 0x10f   :  { %v223_v43 = vmax.f32 %v193_v39, 0.0  ;;  %v220_v44 = vpop.f32.mrf.mxu0 }
 0x110   :  { %v224_v45 = vmax.f32 %v206_v41, 0.0 }
 0x111   :  { %v227_v46 = vpack.c.bf16 %v223_v43, %v223_v43 }
 0x112   :  { %v228_v47 = vpack.c.bf16 %v224_v45, %v224_v45 }
 0x113   :  { %511 = vmatmul.bf16.vlgmr.msrb.gmra.mxu2 %v227_v46 }
 0x114   :  { %524 = vmatmul.bf16.vlgmr.msrb.gmra.mxu3 %v228_v47  ;;  %v194_v48 = vpop.f32.mrf.mxu2 }
 0x115   :  { %v207_v49 = vpop.f32.mrf.mxu3 }
 0x18a   :  { %v499_v51 = vpop.f32.mrf.mxu1 }
 0x18b   :  { %v538_v52 = vpop.f32.mrf.mxu0  ;;  %v500_v56 = vadd.f32 %v830_v53, %v499_v51 }
 0x192   :  { %v501_v54 = vpop.f32.mrf.mxu1 }
 0x193   :  { %v540_v55 = vpop.f32.mrf.mxu0 }
 0x196   :  { %v512_v57 = vpop.f32.mrf.mxu2 }
 0x197   :  { %v513_v58 = vadd.f32 %v512_v57, %v500_v56  ;;  %v525_v59 = vpop.f32.mrf.mxu3 }
 0x199   :  { %v526_v60 = vadd.f32 %v525_v59, %v513_v58 }
 0x19b   :  { %v539_v61 = vadd.f32 %v538_v52, %v526_v60 }
 0x19d   :  { %v542_v62 = vmax.f32 %v539_v61, 0.0 }
 0x19e   :  { %v514_v63 = vpop.f32.mrf.mxu2 }
 0x19f   :  { %v527_v0 = vpop.f32.mrf.mxu3  ;;  %560 = vperm.xlu1 %827, %v542_v62   ;;  %544 = vrot.lane.b32.xlu0 %v542_v62, %s834_s8 }
 0x211   :  { %v545_v1 = vpop.permute.xlu0 %544  ;;  %v561_v9 = vpop.permute.xlu1 %560 }
 0x212   :  { %v548_v2 = vsel %vm547_vm2, %v545_v1, 0.0  ;;  %v563_v12 = vadd.f32 %v561_v9, %v542_v62 }
 0x213   :  { %549 = vadd.xlane.f32.xlu0 %v548_v2 }
 0x286   :  { %v550_v11 = vpop.xlane.xlu0 %549 }
 0x287   :  { %v558_v13 = vmul.f32 %v557_v10, %v550_v11 }
 0x289   :  { %v564_v14 = vsub.f32 %v563_v12, %v558_v13 }
 0x28b   :  { %566 = vrot.lane.b32.xlu1 %v564_v14, %s834_s8 }
 0x2fd   :  { %v567_v15 = vpop.permute.xlu1 %566 }
 0x2fe   :  { %569 = vst.msk [vmem:[%s1096_s7] sm:$0xff] %vm547_vm2, %v567_v15 }

</bundles_post_ra>
